<compile_context>
chip_gen: v7x
topology: tpu7x:2x2x1
jax: 0.10.0
libtpu: 0.0.40
codegen_flags: <defaults>
</compile_context>

<pallas_src>
import functools

import jax
import jax.numpy as jnp
from jax.experimental import pallas as pl
from jax.experimental.pallas import tpu as pltpu

BN_EPS = 1e-5
LEAKY_SLOPE = 0.01                      # nn.LeakyReLU() default


def _shift_flat(x, delta):
    """Circular shift along the last (lane) axis: out[..., f] = x[..., f - delta].
    Wrapped entries are only consumed at positions the caller masks (reflect boundary)."""
    n = x.shape[-1]
    d = delta % n
    if d == 0:
        return x
    return jnp.concatenate([x[..., n - d:], x[..., :n - d]], axis=-1)


def _tap_stack(x, col_idx, H, W):
    """x: (C, H*W) lane-dense slab; col_idx: (1, H*W) int32 'w' coordinate per position.
    Returns (9*C, H*W): the 9 taps of a 3x3 conv with reflect pad 1, stacked along the
    sublane/channel axis in t = 3*kh + kw order (channel fastest within a tap)."""
    HW = x.shape[-1]
    flat = jax.lax.broadcasted_iota(jnp.int32, (1, HW), 1)
    top = flat < W                         # h == 0
    bottom = flat >= (H - 1) * W           # h == H-1
    left = col_idx == 0                    # w == 0
    right = col_idx == W - 1               # w == W-1

    up_w, dn_w = _shift_flat(x, W), _shift_flat(x, -W)
    rows = (
        jnp.where(top, dn_w, up_w),        # kh=0: x[h-1,w]; reflect at h=0   -> x[1,w]
        x,                                 # kh=1: x[h,w]
        jnp.where(bottom, up_w, dn_w),     # kh=2: x[h+1,w]; reflect at h=H-1 -> x[H-2,w]
    )
    taps = []
    for r in rows:
        lm, rp = _shift_flat(r, 1), _shift_flat(r, -1)
        taps.append(jnp.where(left, rp, lm))    # kw=0: r[h,w-1]; reflect at w=0   -> r[h,1]
        taps.append(r)                          # kw=1
        taps.append(jnp.where(right, lm, rp))   # kw=2: r[h,w+1]; reflect at w=W-1 -> r[h,W-2]
    return jnp.concatenate(taps, axis=0)        # (9*C, H*W)


def _double_conv_kernel(H, W, col_ref, x_ref, w1_ref, b1_ref, w2_ref, b2_ref, o_ref):
    """NB batch elements per grid step, all in lane-dense (C, H*W) orientation.

    col_ref: (1, H*W)        int32 column (w) index per flat spatial position
    x_ref:   (NB, Cin, H*W)  input (free reshape of NCHW)
    w1_ref:  (Cmid, 9*Cin)   stage-1 im2col weights (BN1 scale folded), col = t*Cin + ci
    b1_ref:  (Cmid, 1)       stage-1 folded BN bias
    w2_ref:  (Cmid, 9*Cmid)  stage-2 im2col weights (BN2 scale folded)
    b2_ref:  (Cmid, 1)       stage-2 folded BN bias
    o_ref:   (NB, Cmid, H*W) output, NCHW-flat -> lane-dense stores
    """
    col = col_ref[...]
    for n in range(x_ref.shape[0]):                  # static unroll over the batch block
        # ---- stage 1: conv3x3(reflect)*bn_scale + bn_bias -> LeakyReLU (one fat dot) ----
        p1 = _tap_stack(x_ref[n], col, H, W)         # (9*Cin, HW)
        y1 = jnp.dot(w1_ref[...], p1, preferred_element_type=jnp.float32) + b1_ref[...]
        y1 = jnp.where(y1 >= 0, y1, LEAKY_SLOPE * y1)            # (Cmid, HW)
        # TODO(synk): Dropout2d(0.3) is identity in eval mode; training-mode channel
        #             dropout and training-mode BN batch statistics are not modeled.
        # ---- stage 2: same, K = 9*Cmid; activation stays on-chip ----
        p2 = _tap_stack(y1, col, H, W)               # (9*Cmid, HW)
        y2 = jnp.dot(w2_ref[...], p2, preferred_element_type=jnp.float32) + b2_ref[...]
        y2 = jnp.where(y2 >= 0, y2, LEAKY_SLOPE * y2)            # (Cmid, HW)
        o_ref[n] = y2.astype(o_ref.dtype)            # lane-dense (HW = 2*128) NCHW store


def fold_bn(gamma, beta, mean, var):
    scale = gamma / jnp.sqrt(var + BN_EPS)
    bias = beta - mean * scale
    return scale, bias


def _pack_taps(w_oihw, scale):
    """OIHW conv weight (+ folded BN scale) -> (O, 9*I) im2col matrix, col = (3*kh+kw)*I + i."""
    o, i = w_oihw.shape[0], w_oihw.shape[1]
    w = w_oihw * scale[:, None, None, None]
    return jnp.transpose(w, (0, 2, 3, 1)).reshape(o, 9 * i).astype(jnp.float32)


def _fold_batch_into_one_step():
    """True on single-TensorCore chips (v5e/v6e): one grid step for the whole batch.
    False (parallel batch grid) on v7x / megacore / unknown — always correct either way."""
    try:
        kind = jax.devices()[0].device_kind.lower()
    except Exception:
        return False
    return ("v6" in kind) or ("v5" in kind and "v5p" not in kind)


def double_conv(x_nchw, w1_oihw, bn1, w2_oihw, bn2):
    """DoubleConv forward (eval mode). x_nchw: (N, Cin, H, W) -> (N, Cout, H, W)."""
    N, Cin, H, W = x_nchw.shape
    Cmid = w1_oihw.shape[0]
    HW = H * W
    assert H >= 2 and W >= 2, "reflect padding of 1 requires H, W >= 2"

    s1, b1 = fold_bn(*bn1)
    s2, b2 = fold_bn(*bn2)
    w1p = _pack_taps(w1_oihw, s1)                       # (Cmid, 9*Cin)
    w2p = _pack_taps(w2_oihw, s2)                       # (Cmid, 9*Cmid)
    b1c = b1.reshape(Cmid, 1).astype(jnp.float32)
    b2c = b2.reshape(Cmid, 1).astype(jnp.float32)

    # Free reshape of NCHW (no wrapper transpose); tiny column-index row for the reflect masks.
    x_flat = x_nchw.reshape(N, Cin, HW)
    col_idx = jnp.tile(jnp.arange(W, dtype=jnp.int32), H).reshape(1, HW)

    nb = N if _fold_batch_into_one_step() else 1        # batch elements per grid step
    kernel = functools.partial(_double_conv_kernel, H, W)
    out_flat = pl.pallas_call(
        kernel,
        out_shape=jax.ShapeDtypeStruct((N, Cmid, HW), x_nchw.dtype),
        grid=(N // nb,),
        in_specs=[
            pl.BlockSpec((1, HW), lambda n: (0, 0)),
            pl.BlockSpec((nb, Cin, HW), lambda n: (n, 0, 0)),
            pl.BlockSpec((Cmid, 9 * Cin), lambda n: (0, 0)),
            pl.BlockSpec((Cmid, 1), lambda n: (0, 0)),
            pl.BlockSpec((Cmid, 9 * Cmid), lambda n: (0, 0)),
            pl.BlockSpec((Cmid, 1), lambda n: (0, 0)),
        ],
        out_specs=pl.BlockSpec((nb, Cmid, HW), lambda n: (n, 0, 0)),
        compiler_params=pltpu.CompilerParams(
            dimension_semantics=("parallel",)),
    )(col_idx, x_flat, w1p, b1c, w2p, b2c)

    # (N, Cmid, H*W) -> (N, Cmid, H, W): minor-dim split of a contiguous array (free).
    return out_flat.reshape(N, Cmid, H, W)


# ----------------------------- pure-JAX reference -----------------------------
def _ref_stage(x_nchw, w_oihw, gamma, beta, mean, var):
    xp = jnp.pad(x_nchw, ((0, 0), (0, 0), (1, 1), (1, 1)), mode="reflect")
    y = jax.lax.conv_general_dilated(
        xp, w_oihw, window_strides=(1, 1), padding="VALID",
        dimension_numbers=("NCHW", "OIHW", "NCHW"))
    c = (None, slice(None), None, None)
    y = (y - mean[c]) / jnp.sqrt(var[c] + BN_EPS) * gamma[c] + beta[c]
    return jnp.where(y >= 0, y, LEAKY_SLOPE * y)


def ref_double_conv(x, w1, bn1, w2, bn2):
    y = _ref_stage(x, w1, *bn1)
    return _ref_stage(y, w2, *bn2)


if __name__ == "__main__":
    in_channel, out_channel = 4, 8
    N, H, W = 2, 16, 16

    key = jax.random.PRNGKey(0)
    ks = jax.random.split(key, 11)

    x = jax.random.normal(ks[0], (N, in_channel, H, W), jnp.float32)

    # Conv weights (PyTorch OIHW), BN params (gamma, beta, running_mean, running_var).
    w1 = jax.random.normal(ks[1], (out_channel, in_channel, 3, 3), jnp.float32) * 0.1
    bn1 = (jax.random.uniform(ks[2], (out_channel,), jnp.float32, 0.5, 1.5),   # gamma
           jax.random.normal(ks[3], (out_channel,), jnp.float32) * 0.1,        # beta
           jax.random.normal(ks[4], (out_channel,), jnp.float32) * 0.1,        # running_mean
           jax.random.uniform(ks[5], (out_channel,), jnp.float32, 0.5, 1.5))   # running_var

    w2 = jax.random.normal(ks[6], (out_channel, out_channel, 3, 3), jnp.float32) * 0.1
    bn2 = (jax.random.uniform(ks[7], (out_channel,), jnp.float32, 0.5, 1.5),
           jax.random.normal(ks[8], (out_channel,), jnp.float32) * 0.1,
           jax.random.normal(ks[9], (out_channel,), jnp.float32) * 0.1,
           jax.random.uniform(ks[10], (out_channel,), jnp.float32, 0.5, 1.5))

    out = jax.block_until_ready(double_conv(x, w1, bn1, w2, bn2))
    ref = jax.block_until_ready(ref_double_conv(x, w1, bn1, w2, bn2))

    assert out.shape == (N, out_channel, H, W), out.shape
    assert jnp.allclose(out, ref, atol=1e-4, rtol=1e-4), float(jnp.max(jnp.abs(out - ref)))
    print("KERNEL_OK")
</pallas_src>

<mosaic_0001>
module attributes {stable_mosaic.version = 11 : i64} {
  func.func @_double_conv_kernel(%arg0: i32, %arg1: memref<1x256xi32, #tpu.memory_space<vmem>>, %arg2: memref<1x4x256xf32, #tpu.memory_space<vmem>>, %arg3: memref<8x36xf32, #tpu.memory_space<vmem>>, %arg4: memref<8x1xf32, #tpu.memory_space<vmem>>, %arg5: memref<8x72xf32, #tpu.memory_space<vmem>>, %arg6: memref<8x1xf32, #tpu.memory_space<vmem>>, %arg7: memref<1x8x256xf32, #tpu.memory_space<vmem>>) attributes {dimension_semantics = [#tpu.dimension_semantics<parallel>], iteration_bounds = array<i64: 2>, scalar_prefetch = 0 : i64, scratch_operands = 0 : i64, tpu.core_type = #tpu.core_type<tc>, window_params = [{pipeline_mode = #tpu.pipeline_mode<synchronous>, transform_indices = @transform_0, window_bounds = array<i64: 1, 256>}, {transform_indices = @transform_1, window_bounds = array<i64: 1, 4, 256>}, {pipeline_mode = #tpu.pipeline_mode<synchronous>, transform_indices = @transform_2, window_bounds = array<i64: 8, 36>}, {pipeline_mode = #tpu.pipeline_mode<synchronous>, transform_indices = @transform_3, window_bounds = array<i64: 8, 1>}, {pipeline_mode = #tpu.pipeline_mode<synchronous>, transform_indices = @transform_4, window_bounds = array<i64: 8, 72>}, {pipeline_mode = #tpu.pipeline_mode<synchronous>, transform_indices = @transform_5, window_bounds = array<i64: 8, 1>}, {transform_indices = @transform_6, window_bounds = array<i64: 1, 8, 256>}]} {
    %c0 = arith.constant 0 : index
    %c0_0 = arith.constant 0 : index
    %0 = vector.load %arg1[%c0, %c0_0] : memref<1x256xi32, #tpu.memory_space<vmem>>, vector<1x256xi32>
    %c0_1 = arith.constant 0 : index
    %c0_2 = arith.constant 0 : index
    %c0_3 = arith.constant 0 : index
    %1 = vector.load %arg2[%c0_1, %c0_2, %c0_3] : memref<1x4x256xf32, #tpu.memory_space<vmem>>, vector<1x4x256xf32>
    %2 = vector.shape_cast %1 : vector<1x4x256xf32> to vector<4x256xf32>
    %3 = tpu.iota {dimensions = array<i32: 1>} : vector<1x256xi32>
    %c16_i32 = arith.constant 16 : i32
    %4 = vector.broadcast %c16_i32 : i32 to vector<1x256xi32>
    %5 = arith.cmpi slt, %3, %4 : vector<1x256xi32>
    %c240_i32 = arith.constant 240 : i32
    %6 = vector.broadcast %c240_i32 : i32 to vector<1x256xi32>
    %7 = arith.cmpi sge, %3, %6 : vector<1x256xi32>
    %c0_i32 = arith.constant 0 : i32
    %8 = vector.broadcast %c0_i32 : i32 to vector<1x256xi32>
    %9 = arith.cmpi eq, %0, %8 : vector<1x256xi32>
    %c15_i32 = arith.constant 15 : i32
    %10 = vector.broadcast %c15_i32 : i32 to vector<1x256xi32>
    %11 = arith.cmpi eq, %0, %10 : vector<1x256xi32>
    %12 = vector.extract_strided_slice %2 {offsets = [0, 240], sizes = [4, 16], strides = [1, 1]} : vector<4x256xf32> to vector<4x16xf32>
    %13 = vector.extract_strided_slice %2 {offsets = [0, 0], sizes = [4, 240], strides = [1, 1]} : vector<4x256xf32> to vector<4x240xf32>
    %14 = tpu.concatenate %12, %13 in 1 : vector<4x16xf32>, vector<4x240xf32> -> vector<4x256xf32>
    %15 = vector.extract_strided_slice %2 {offsets = [0, 16], sizes = [4, 240], strides = [1, 1]} : vector<4x256xf32> to vector<4x240xf32>
    %16 = vector.extract_strided_slice %2 {offsets = [0, 0], sizes = [4, 16], strides = [1, 1]} : vector<4x256xf32> to vector<4x16xf32>
    %17 = tpu.concatenate %15, %16 in 1 : vector<4x240xf32>, vector<4x16xf32> -> vector<4x256xf32>
    %18 = vector.shape_cast %5 : vector<1x256xi1> to vector<1x256xi1>
    %19 = vector.broadcast %18 : vector<1x256xi1> to vector<4x256xi1>
    %20 = arith.select %19, %17, %14 : vector<4x256xi1>, vector<4x256xf32>
    %21 = vector.shape_cast %7 : vector<1x256xi1> to vector<1x256xi1>
    %22 = vector.broadcast %21 : vector<1x256xi1> to vector<4x256xi1>
    %23 = arith.select %22, %14, %17 : vector<4x256xi1>, vector<4x256xf32>
    %24 = vector.extract_strided_slice %20 {offsets = [0, 255], sizes = [4, 1], strides = [1, 1]} : vector<4x256xf32> to vector<4x1xf32>
    %25 = vector.extract_strided_slice %20 {offsets = [0, 0], sizes = [4, 255], strides = [1, 1]} : vector<4x256xf32> to vector<4x255xf32>
    %26 = tpu.concatenate %24, %25 in 1 : vector<4x1xf32>, vector<4x255xf32> -> vector<4x256xf32>
    %27 = vector.extract_strided_slice %20 {offsets = [0, 1], sizes = [4, 255], strides = [1, 1]} : vector<4x256xf32> to vector<4x255xf32>
    %28 = vector.extract_strided_slice %20 {offsets = [0, 0], sizes = [4, 1], strides = [1, 1]} : vector<4x256xf32> to vector<4x1xf32>
    %29 = tpu.concatenate %27, %28 in 1 : vector<4x255xf32>, vector<4x1xf32> -> vector<4x256xf32>
    %30 = vector.shape_cast %9 : vector<1x256xi1> to vector<1x256xi1>
    %31 = vector.broadcast %30 : vector<1x256xi1> to vector<4x256xi1>
    %32 = arith.select %31, %29, %26 : vector<4x256xi1>, vector<4x256xf32>
    %33 = vector.shape_cast %11 : vector<1x256xi1> to vector<1x256xi1>
    %34 = vector.broadcast %33 : vector<1x256xi1> to vector<4x256xi1>
    %35 = arith.select %34, %26, %29 : vector<4x256xi1>, vector<4x256xf32>
    %36 = vector.extract_strided_slice %2 {offsets = [0, 255], sizes = [4, 1], strides = [1, 1]} : vector<4x256xf32> to vector<4x1xf32>
    %37 = vector.extract_strided_slice %2 {offsets = [0, 0], sizes = [4, 255], strides = [1, 1]} : vector<4x256xf32> to vector<4x255xf32>
    %38 = tpu.concatenate %36, %37 in 1 : vector<4x1xf32>, vector<4x255xf32> -> vector<4x256xf32>
    %39 = vector.extract_strided_slice %2 {offsets = [0, 1], sizes = [4, 255], strides = [1, 1]} : vector<4x256xf32> to vector<4x255xf32>
    %40 = vector.extract_strided_slice %2 {offsets = [0, 0], sizes = [4, 1], strides = [1, 1]} : vector<4x256xf32> to vector<4x1xf32>
    %41 = tpu.concatenate %39, %40 in 1 : vector<4x255xf32>, vector<4x1xf32> -> vector<4x256xf32>
    %42 = vector.shape_cast %9 : vector<1x256xi1> to vector<1x256xi1>
    %43 = vector.broadcast %42 : vector<1x256xi1> to vector<4x256xi1>
    %44 = arith.select %43, %41, %38 : vector<4x256xi1>, vector<4x256xf32>
    %45 = vector.shape_cast %11 : vector<1x256xi1> to vector<1x256xi1>
    %46 = vector.broadcast %45 : vector<1x256xi1> to vector<4x256xi1>
    %47 = arith.select %46, %38, %41 : vector<4x256xi1>, vector<4x256xf32>
    %48 = vector.extract_strided_slice %23 {offsets = [0, 255], sizes = [4, 1], strides = [1, 1]} : vector<4x256xf32> to vector<4x1xf32>
    %49 = vector.extract_strided_slice %23 {offsets = [0, 0], sizes = [4, 255], strides = [1, 1]} : vector<4x256xf32> to vector<4x255xf32>
    %50 = tpu.concatenate %48, %49 in 1 : vector<4x1xf32>, vector<4x255xf32> -> vector<4x256xf32>
    %51 = vector.extract_strided_slice %23 {offsets = [0, 1], sizes = [4, 255], strides = [1, 1]} : vector<4x256xf32> to vector<4x255xf32>
    %52 = vector.extract_strided_slice %23 {offsets = [0, 0], sizes = [4, 1], strides = [1, 1]} : vector<4x256xf32> to vector<4x1xf32>
    %53 = tpu.concatenate %51, %52 in 1 : vector<4x255xf32>, vector<4x1xf32> -> vector<4x256xf32>
    %54 = vector.shape_cast %9 : vector<1x256xi1> to vector<1x256xi1>
    %55 = vector.broadcast %54 : vector<1x256xi1> to vector<4x256xi1>
    %56 = arith.select %55, %53, %50 : vector<4x256xi1>, vector<4x256xf32>
    %57 = vector.shape_cast %11 : vector<1x256xi1> to vector<1x256xi1>
    %58 = vector.broadcast %57 : vector<1x256xi1> to vector<4x256xi1>
    %59 = arith.select %58, %50, %53 : vector<4x256xi1>, vector<4x256xf32>
    %60 = tpu.concatenate %32, %20, %35, %44, %2, %47, %56, %23, %59 in 0 : vector<4x256xf32>, vector<4x256xf32>, vector<4x256xf32>, vector<4x256xf32>, vector<4x256xf32>, vector<4x256xf32>, vector<4x256xf32>, vector<4x256xf32>, vector<4x256xf32> -> vector<36x256xf32>
    %c0_4 = arith.constant 0 : index
    %c0_5 = arith.constant 0 : index
    %61 = vector.load %arg3[%c0_4, %c0_5] : memref<8x36xf32, #tpu.memory_space<vmem>>, vector<8x36xf32>
    %cst = arith.constant dense<0.000000e+00> : vector<8x256xf32>
    %62 = tpu.matmul %61, %60, %cst {dimension_numbers = #tpu.dot_dimension_numbers<[1], [0], [0], [1], [0, 0, 1, 1], [], []>} : vector<8x36xf32>, vector<36x256xf32>, vector<8x256xf32> -> vector<8x256xf32>
    %c0_6 = arith.constant 0 : index
    %c0_7 = arith.constant 0 : index
    %63 = vector.load %arg4[%c0_6, %c0_7] : memref<8x1xf32, #tpu.memory_space<vmem>>, vector<8x1xf32>
    %64 = vector.broadcast %63 : vector<8x1xf32> to vector<8x256xf32>
    %65 = arith.addf %62, %64 : vector<8x256xf32>
    %cst_8 = arith.constant 0.000000e+00 : f32
    %66 = vector.broadcast %cst_8 : f32 to vector<8x256xf32>
    %67 = arith.cmpf oge, %65, %66 : vector<8x256xf32>
    %cst_9 = arith.constant 0.00999999977 : f32
    %68 = vector.broadcast %cst_9 : f32 to vector<8x256xf32>
    %69 = arith.mulf %68, %65 : vector<8x256xf32>
    %70 = arith.select %67, %65, %69 : vector<8x256xi1>, vector<8x256xf32>
    %71 = tpu.iota {dimensions = array<i32: 1>} : vector<1x256xi32>
    %c16_i32_10 = arith.constant 16 : i32
    %72 = vector.broadcast %c16_i32_10 : i32 to vector<1x256xi32>
    %73 = arith.cmpi slt, %71, %72 : vector<1x256xi32>
    %c240_i32_11 = arith.constant 240 : i32
    %74 = vector.broadcast %c240_i32_11 : i32 to vector<1x256xi32>
    %75 = arith.cmpi sge, %71, %74 : vector<1x256xi32>
    %c0_i32_12 = arith.constant 0 : i32
    %76 = vector.broadcast %c0_i32_12 : i32 to vector<1x256xi32>
    %77 = arith.cmpi eq, %0, %76 : vector<1x256xi32>
    %c15_i32_13 = arith.constant 15 : i32
    %78 = vector.broadcast %c15_i32_13 : i32 to vector<1x256xi32>
    %79 = arith.cmpi eq, %0, %78 : vector<1x256xi32>
    %80 = vector.extract_strided_slice %70 {offsets = [0, 240], sizes = [8, 16], strides = [1, 1]} : vector<8x256xf32> to vector<8x16xf32>
    %81 = vector.extract_strided_slice %70 {offsets = [0, 0], sizes = [8, 240], strides = [1, 1]} : vector<8x256xf32> to vector<8x240xf32>
    %82 = tpu.concatenate %80, %81 in 1 : vector<8x16xf32>, vector<8x240xf32> -> vector<8x256xf32>
    %83 = vector.extract_strided_slice %70 {offsets = [0, 16], sizes = [8, 240], strides = [1, 1]} : vector<8x256xf32> to vector<8x240xf32>
    %84 = vector.extract_strided_slice %70 {offsets = [0, 0], sizes = [8, 16], strides = [1, 1]} : vector<8x256xf32> to vector<8x16xf32>
    %85 = tpu.concatenate %83, %84 in 1 : vector<8x240xf32>, vector<8x16xf32> -> vector<8x256xf32>
    %86 = vector.shape_cast %73 : vector<1x256xi1> to vector<1x256xi1>
    %87 = vector.broadcast %86 : vector<1x256xi1> to vector<8x256xi1>
    %88 = arith.select %87, %85, %82 : vector<8x256xi1>, vector<8x256xf32>
    %89 = vector.shape_cast %75 : vector<1x256xi1> to vector<1x256xi1>
    %90 = vector.broadcast %89 : vector<1x256xi1> to vector<8x256xi1>
    %91 = arith.select %90, %82, %85 : vector<8x256xi1>, vector<8x256xf32>
    %92 = vector.extract_strided_slice %88 {offsets = [0, 255], sizes = [8, 1], strides = [1, 1]} : vector<8x256xf32> to vector<8x1xf32>
    %93 = vector.extract_strided_slice %88 {offsets = [0, 0], sizes = [8, 255], strides = [1, 1]} : vector<8x256xf32> to vector<8x255xf32>
    %94 = tpu.concatenate %92, %93 in 1 : vector<8x1xf32>, vector<8x255xf32> -> vector<8x256xf32>
    %95 = vector.extract_strided_slice %88 {offsets = [0, 1], sizes = [8, 255], strides = [1, 1]} : vector<8x256xf32> to vector<8x255xf32>
    %96 = vector.extract_strided_slice %88 {offsets = [0, 0], sizes = [8, 1], strides = [1, 1]} : vector<8x256xf32> to vector<8x1xf32>
    %97 = tpu.concatenate %95, %96 in 1 : vector<8x255xf32>, vector<8x1xf32> -> vector<8x256xf32>
    %98 = vector.shape_cast %77 : vector<1x256xi1> to vector<1x256xi1>
    %99 = vector.broadcast %98 : vector<1x256xi1> to vector<8x256xi1>
    %100 = arith.select %99, %97, %94 : vector<8x256xi1>, vector<8x256xf32>
    %101 = vector.shape_cast %79 : vector<1x256xi1> to vector<1x256xi1>
    %102 = vector.broadcast %101 : vector<1x256xi1> to vector<8x256xi1>
    %103 = arith.select %102, %94, %97 : vector<8x256xi1>, vector<8x256xf32>
    %104 = vector.extract_strided_slice %70 {offsets = [0, 255], sizes = [8, 1], strides = [1, 1]} : vector<8x256xf32> to vector<8x1xf32>
    %105 = vector.extract_strided_slice %70 {offsets = [0, 0], sizes = [8, 255], strides = [1, 1]} : vector<8x256xf32> to vector<8x255xf32>
    %106 = tpu.concatenate %104, %105 in 1 : vector<8x1xf32>, vector<8x255xf32> -> vector<8x256xf32>
    %107 = vector.extract_strided_slice %70 {offsets = [0, 1], sizes = [8, 255], strides = [1, 1]} : vector<8x256xf32> to vector<8x255xf32>
    %108 = vector.extract_strided_slice %70 {offsets = [0, 0], sizes = [8, 1], strides = [1, 1]} : vector<8x256xf32> to vector<8x1xf32>
    %109 = tpu.concatenate %107, %108 in 1 : vector<8x255xf32>, vector<8x1xf32> -> vector<8x256xf32>
    %110 = vector.shape_cast %77 : vector<1x256xi1> to vector<1x256xi1>
    %111 = vector.broadcast %110 : vector<1x256xi1> to vector<8x256xi1>
    %112 = arith.select %111, %109, %106 : vector<8x256xi1>, vector<8x256xf32>
    %113 = vector.shape_cast %79 : vector<1x256xi1> to vector<1x256xi1>
    %114 = vector.broadcast %113 : vector<1x256xi1> to vector<8x256xi1>
    %115 = arith.select %114, %106, %109 : vector<8x256xi1>, vector<8x256xf32>
    %116 = vector.extract_strided_slice %91 {offsets = [0, 255], sizes = [8, 1], strides = [1, 1]} : vector<8x256xf32> to vector<8x1xf32>
    %117 = vector.extract_strided_slice %91 {offsets = [0, 0], sizes = [8, 255], strides = [1, 1]} : vector<8x256xf32> to vector<8x255xf32>
    %118 = tpu.concatenate %116, %117 in 1 : vector<8x1xf32>, vector<8x255xf32> -> vector<8x256xf32>
    %119 = vector.extract_strided_slice %91 {offsets = [0, 1], sizes = [8, 255], strides = [1, 1]} : vector<8x256xf32> to vector<8x255xf32>
    %120 = vector.extract_strided_slice %91 {offsets = [0, 0], sizes = [8, 1], strides = [1, 1]} : vector<8x256xf32> to vector<8x1xf32>
    %121 = tpu.concatenate %119, %120 in 1 : vector<8x255xf32>, vector<8x1xf32> -> vector<8x256xf32>
    %122 = vector.shape_cast %77 : vector<1x256xi1> to vector<1x256xi1>
    %123 = vector.broadcast %122 : vector<1x256xi1> to vector<8x256xi1>
    %124 = arith.select %123, %121, %118 : vector<8x256xi1>, vector<8x256xf32>
    %125 = vector.shape_cast %79 : vector<1x256xi1> to vector<1x256xi1>
    %126 = vector.broadcast %125 : vector<1x256xi1> to vector<8x256xi1>
    %127 = arith.select %126, %118, %121 : vector<8x256xi1>, vector<8x256xf32>
    %128 = tpu.concatenate %100, %88, %103, %112, %70, %115, %124, %91, %127 in 0 : vector<8x256xf32>, vector<8x256xf32>, vector<8x256xf32>, vector<8x256xf32>, vector<8x256xf32>, vector<8x256xf32>, vector<8x256xf32>, vector<8x256xf32>, vector<8x256xf32> -> vector<72x256xf32>
    %c0_14 = arith.constant 0 : index
    %c0_15 = arith.constant 0 : index
    %129 = vector.load %arg5[%c0_14, %c0_15] : memref<8x72xf32, #tpu.memory_space<vmem>>, vector<8x72xf32>
    %cst_16 = arith.constant dense<0.000000e+00> : vector<8x256xf32>
    %130 = tpu.matmul %129, %128, %cst_16 {dimension_numbers = #tpu.dot_dimension_numbers<[1], [0], [0], [1], [0, 0, 1, 1], [], []>} : vector<8x72xf32>, vector<72x256xf32>, vector<8x256xf32> -> vector<8x256xf32>
    %c0_17 = arith.constant 0 : index
    %c0_18 = arith.constant 0 : index
    %131 = vector.load %arg6[%c0_17, %c0_18] : memref<8x1xf32, #tpu.memory_space<vmem>>, vector<8x1xf32>
    %132 = vector.broadcast %131 : vector<8x1xf32> to vector<8x256xf32>
    %133 = arith.addf %130, %132 : vector<8x256xf32>
    %cst_19 = arith.constant 0.000000e+00 : f32
    %134 = vector.broadcast %cst_19 : f32 to vector<8x256xf32>
    %135 = arith.cmpf oge, %133, %134 : vector<8x256xf32>
    %cst_20 = arith.constant 0.00999999977 : f32
    %136 = vector.broadcast %cst_20 : f32 to vector<8x256xf32>
    %137 = arith.mulf %136, %133 : vector<8x256xf32>
    %138 = arith.select %135, %133, %137 : vector<8x256xi1>, vector<8x256xf32>
    %c0_21 = arith.constant 0 : index
    %c0_22 = arith.constant 0 : index
    %c0_23 = arith.constant 0 : index
    %139 = vector.load %arg7[%c0_21, %c0_22, %c0_23] : memref<1x8x256xf32, #tpu.memory_space<vmem>>, vector<1x8x256xf32>
    %140 = vector.shape_cast %139 : vector<1x8x256xf32> to vector<8x256xf32>
    %141 = vector.shape_cast %138 : vector<8x256xf32> to vector<1x8x256xf32>
    tpu.vector_store %arg7[%c0_21, %c0_22, %c0_23], %141 {strides = array<i32>} : memref<1x8x256xf32, #tpu.memory_space<vmem>>, vector<1x8x256xf32>,
    return
  }
  func.func @transform_0(%arg0: i32) -> (i32, i32) {
    %c0_i32 = arith.constant 0 : i32
    %c0_i32_0 = arith.constant 0 : i32
    %c0_i32_1 = arith.constant 0 : i32
    return %c0_i32, %c0_i32_0 : i32, i32
  }
  func.func @transform_1(%arg0: i32) -> (i32, i32, i32) {
    %c0_i32 = arith.constant 0 : i32
    %c0_i32_0 = arith.constant 0 : i32
    %c0_i32_1 = arith.constant 0 : i32
    return %arg0, %c0_i32, %c0_i32_0 : i32, i32, i32
  }
  func.func @transform_2(%arg0: i32) -> (i32, i32) {
    %c0_i32 = arith.constant 0 : i32
    %c0_i32_0 = arith.constant 0 : i32
    %c0_i32_1 = arith.constant 0 : i32
    return %c0_i32, %c0_i32_0 : i32, i32
  }
  func.func @transform_3(%arg0: i32) -> (i32, i32) {
    %c0_i32 = arith.constant 0 : i32
    %c0_i32_0 = arith.constant 0 : i32
    %c0_i32_1 = arith.constant 0 : i32
    return %c0_i32, %c0_i32_0 : i32, i32
  }
  func.func @transform_4(%arg0: i32) -> (i32, i32) {
    %c0_i32 = arith.constant 0 : i32
    %c0_i32_0 = arith.constant 0 : i32
    %c0_i32_1 = arith.constant 0 : i32
    return %c0_i32, %c0_i32_0 : i32, i32
  }
  func.func @transform_5(%arg0: i32) -> (i32, i32) {
    %c0_i32 = arith.constant 0 : i32
    %c0_i32_0 = arith.constant 0 : i32
    %c0_i32_1 = arith.constant 0 : i32
    return %c0_i32, %c0_i32_0 : i32, i32
  }
  func.func @transform_6(%arg0: i32) -> (i32, i32, i32) {
    %c0_i32 = arith.constant 0 : i32
    %c0_i32_0 = arith.constant 0 : i32
    %c0_i32_1 = arith.constant 0 : i32
    return %arg0, %c0_i32, %c0_i32_0 : i32, i32, i32
  }
}

</mosaic_0001>

<bundles_post_ra>
// kernel: tpu_custom_call.1
= control target key start
LH: loop header
LB: loop body
LE: loop exit
PB: predicated region body
PF: predicated region fallthrough
CT: control target
= control target key end

     0   :  { %11 = vsyncpa [#allocation3], 0  ;;  %s1423_s0 = inlined_call_operand.hbm [shape: s32[1,256], index: 0, kind: input, shape index: {}]   ;;  %s1424_s1 = inlined_call_operand.vmem [shape: f32[2,4,256], index: 1, kind: input, shape index: {}]   ;;  %s1425_s2 = inlined_call_operand.vmem [shape: f32[8,36], index: 2, kind: input, shape index: {}]   ;;  %s1426_s3 = inlined_call_operand.vmem [shape: f32[8,1], index: 3, kind: input, shape index: {}]   ;;  %s1427_s4 = inlined_call_operand.vmem [shape: f32[8,72], index: 4, kind: input, shape index: {}]   ;;  %s1428_s5 = inlined_call_operand.vmem [shape: f32[8,1], index: 5, kind: input, shape index: {}]   ;;  %s1429_s6 = inlined_call_operand.hbm [shape: f32[2,8,256], index: 6, kind: output, shape index: {}]  }
   0x1   :  { %12 = vsyncpa [#allocation4], 0 }
   0x2   :  { %14 = vsyncpa [#allocation4 + $0x1], 0  ;;  %s1077_s21 = smov 0   ;;  %s1079_s22 = smov 0  }
   0x3   :  { %s1081_s23 = smov 0   ;;  %s1083_s24 = smov 0  }
   0x4 LB: > { %s1098_s25 = sadd.s32 4294967295, %s1032_s24   ;;  %s796_s26 = sadd.s32 4294967294, %s1032_s24   ;;  %s1032_s24 = sphi %s1083_s24, %s1445_s24   ;;  %s1028_s23 = sphi %s1081_s23, %s1444_s23   ;;  %s1024_s22 = sphi %s1079_s22, %s1443_s22   ;;  %s1020_s21 = sphi %s1077_s21, %s1442_s21  }
   0x5   : > { %s1102_s27 = sadd.s32 1, %s1032_s24   ;;  %s158_s28 = sadd.s32 1, %s1028_s23 }
   0x6   : > { %s155_s29 = ssub.s32 %s1032_s24, %s1102_s27  ;;  %p168_p0 = scmp.ne.s32.totalorder %s1028_s23, %s1024_s22 }
   0x7   : > { %p156_p1 = scmp.eq.s32.totalorder %s155_s29, 0  ;;  %p169_p2 = scmp.eq.s32.totalorder %s1098_s25, 1 }
   0x8   : > { %p174_p3 = scmp.ne.s32.totalorder %s1024_s22, %s1020_s21  ;;  %p175_p4 = scmp.eq.s32.totalorder %s796_s26, 1 }
   0x9   : > { %s1113_s30 = scalar_select %p156_p1, %s1028_s23, %s158_s28  }
   0xa   : > { %p1115_p5 = por %p169_p2, %p168_p0  ;;  %p1119_p6 = por %p175_p4, %p174_p3 }
   0xb   : > { %p797_p7 = scmp.ge.s32.totalorder %s1032_s24, 1  ;;  %p182_p8 = scmp.lt.s32.totalorder %s1032_s24, 3 }
   0xc   : > { %s1433_s7 = scalar_select %p1115_p5, 1, 0 }
   0xd   : > { %s1434_s8 = scalar_select %p1119_p6, 1, 0 }
   0xe   : > { %p1430_p9 = scmp.eq.s32.totalorder %s1098_s25, 0  ;;  %p1126_p10 = pnand %p797_p7, %p182_p8 }
   0xf   : > { %s1034_s10 = smov [#allocation2]   ;;  %s938_s15 = scalar_lea.hbm %s1423_s0, 32 }
  0x10   : > { %s1435_s9 = scalar_select %p1126_p10, 1, 0 }
  0x11   : > { %s195_s11 = sshll.u32 %s1034_s10, 4  ;;  %p846_p11 = pneg %p1126_p10  ;;  %s196_s11 = int_to_ptr.vmem [resolvable:$true] %s195_s11 }
  0x12   : > { %p939_p13 = scmp.ne.s32.totalorder %s1423_s0, %s938_s15  ;;  %p945_p3 = scmp.lt.u32.totalorder %s938_s15, %s1423_s0 }
  0x13   : > { %p1134_p12 = pnand %p1430_p9, %p846_p11 }
  0x15   : > { %p940_p0 = pneg %p1134_p12 }
  0x17   : > { %p941_p1 = pnand %p940_p0, %p939_p13 }
  0x19   : > { %p942_p2 = pneg %p941_p1 }
  0x1b   : > { %p947_p4 = pnand %p945_p3, %p942_p2 }
  0x1d   : > { %950 = shalt.err (!%p947_p4)
}
  0x1e   : > { %s951_s20 = scalar_lea.vmem %s196_s11, 32  ;;  %p959_p9 = scmp.lt.s32.totalorder %s196_s11, %s196_s11 }
  0x1f   : > { %p952_p7 = scmp.ne.s32.totalorder %s196_s11, %s951_s20  ;;  %p960_p6 = scmp.lt.s32.totalorder %s951_s20, %s951_s20 }
  0x21   : > { %p954_p8 = pnand %p952_p7, %p940_p0  ;;  %p961_p5 = por %p960_p6, %p959_p9 }
  0x23   : > { %p955_p11 = pneg %p954_p8 }
  0x25   : > { %p962_p10 = pnand %p961_p5, %p955_p11 }
  0x27   : > { %965 = shalt.err (!%p962_p10)
}
  0x28   : > { %849 = dma.hbm_to_vmem [thread:$0]  (!%p1134_p12), %s1423_s0, 32, %s196_s11, [#allocation3]  }
  0x29   : > { %p1437_p13 = scmp.ne.s32.totalorder %s1435_s9, 0 }
  0x2a   : > { %p1438_p1 = scmp.eq.s32.totalorder (!%p1437_p13), %s1098_s25, 0 }
  0x2b   : > { %228 = sbr.rel (%p1437_p13) target bundleno = 1033 (0x409), region = 44 }
  0x32   : > { %1011 = dma.done.wait (%p1438_p1), [#allocation3], 32   ;;  %p1439_p0 = pmov %p1438_p1 }
  0x33   : > { %p258_p6 = scmp.lt.s32.totalorder %s1098_s25, 1  ;;  %v1035_v0 = vmov 0   ;;  %s1036_s9 = smov 112   ;;  %v265_v5 = vlaneseq  ;;  %vm290_vm0 = vcmask 916480   ;;  %vm281_vm1 = vcmask 130048   ;;  %v433_v21 = vld [vmem:[%s1426_s3] sm:$0xff] }
  0x34   : > { %1013 = vsyncadd (%p1439_p0), [#allocation3], 4294967264  ;;  %916 = vset.pattern.permute.xlu0 %v1035_v0  ;;  %s1037_s14 = smov 16   ;;  %s1038_s15 = smov 127   ;;  %v1040_v20 = vmov 0.0   ;;  %vm324_vm6 = vcmask 1039360  }
  0x35   : > { %s259_s29 = scalar_select %p258_p6, %s1098_s25, 1  ;;  %v1185_v8 = vand.u32 127, %v265_v5  ;;  %513 = vmatprep.mubr.f32.mxu0 %v1040_v20  ;;  %695 = vmatprep.mubr.f32.mxu1 %v1040_v20  ;;  %v263_v22 = vld [vmem:[#allocation2] sm:$0x3]  ;;  %v332_v23 = vshrl.u32 %v265_v5, 7  ;;  %vm315_vm7 = vcmask 7168  }
  0x36   : > { %s1039_s16 = smov 1   ;;  %vm272_vm4 = vcmp.eq.s32.totalorder %v263_v22, 0  ;;  %vm273_vm5 = vcmp.eq.s32.totalorder %v263_v22, 15  ;;  %vm423_vm12 = vcmask 1043456   ;;  %vm439_vm13 = vcmask 293888   ;;  %s255_s12 = sand.u32 1, %s1024_s22  }
  0x37   : > { %s814_s10 = sshll.u32 %s259_s29, 3  ;;  %vm268_vm2 = vcmp.lt.s32.totalorder %v1185_v8, 16  ;;  %v1198_v14 = vadd.s32 128, %v1185_v8  ;;  %v333_v24 = vsub.s32 0, %v332_v23  ;;  %v337_v25 = vsub.s32 1, %v332_v23  ;;  %s802_s13 = sshll.u32 %s255_s12, 4 }
  0x38   : > { %s262_s11 = scalar_lea.vmem %s1424_s1, %s814_s10  ;;  %v330_v26 = vsel %vm272_vm4, 1, %v1035_v0  ;;  %v343_v29 = vsel %vm273_vm5, 1, %v1035_v0  ;;  %p1440_p9 = scmp.ne.s32.totalorder %s1433_s7, 0 }
  0x39   : > { %v1165_v1 = vld [vmem:[%s262_s11] sm:$0xff]  ;;  %vm271_vm3 = vcmp.ge.s32.totalorder %v1198_v14, 240  ;;  %v1227_v30 = vrot.slane %v330_v26, %v333_v24  ;;  %v1229_v31 = vrot.slane %v330_v26, %v337_v25  ;;  %v1231_v36 = vrot.slane %v343_v29, %v333_v24  ;;  %s815_s11 = sshll.u32 %s1098_s25, 8  ;;  %s711_s25 = scalar_lea.sflag [#allocation4], %s255_s12 }
  0x3a   : > { %286 = vrot.lane.b32.xlu1 %v1165_v1, %s1036_s9  ;;  %v1171_v2 = vcombine.high %v1165_v1, %v1165_v1  ;;  %v1233_v37 = vrot.slane %v343_v29, %v337_v25  ;;  %s1381_s17 = scalar_lea.hbm %s1429_s6, %s815_s11  ;;  %s1041_s19 = smov [#allocation5]  }
  0x3b   : > { %vm339_vm8 = vcmp.eq.s32.totalorder %v1227_v30, 1  ;;  %vm340_vm9 = vcmp.eq.s32.totalorder %v1229_v31, 1  ;;  %vm352_vm10 = vcmp.eq.s32.totalorder %v1231_v36, 1  ;;  %s970_s20 = sshll.u32 %s1041_s19, 4  ;;  %s971_s20 = int_to_ptr.vmem [resolvable:$false] %s970_s20 }
  0x3c   : > { %276 = vrot.lane.b32.xlu0 %v1171_v2, %s1037_s14  ;;  %v901_v3 = vpack.i.bf16 %v1171_v2, %v1165_v1  ;;  %v896_v4 = vpack.i.bf16 %v1165_v1, %v1171_v2  ;;  %vm353_vm11 = vcmp.eq.s32.totalorder %v1233_v37, 1  ;;  %s972_s26 = scalar_lea.vmem %s971_s20, 512 }
  0x3e   : > { %288 = vrot.lane.b32.xlu1 %v1171_v2, %s1036_s9 }
  0x40   : > { %279 = vrot.lane.b32.xlu0 %v1165_v1, %s1037_s14 }
  0x42   : > { %902 = vrot.lane.b32.xlu1 %v901_v3, %s1038_s15 }
  0x44   : > { %897 = vrot.lane.b32.xlu0 %v896_v4, %s1039_s16 }
  0xac   : > { %v287_v6 = vpop.permute.xlu1 %286 }
  0xae   : > { %v277_v7 = vpop.permute.xlu0 %276 }
  0xb0   : > { %v289_v9 = vpop.permute.xlu1 %288 }
  0xb1   : > { %v1188_v10 = vsel %vm290_vm0, %v287_v6, %v289_v9  ;;  %v295_v18 = vsel %vm290_vm0, %v289_v9, %v287_v6 }
  0xb2   : > { %383 = vrot.lane.b32.xlu1 %v1188_v10, %s1039_s16  ;;  %v280_v11 = vpop.permute.xlu0 %279 }
  0xb3   : > { %v1194_v12 = vsel %vm281_vm1, %v280_v11, %v277_v7  ;;  %v285_v13 = vsel %vm281_vm1, %v277_v7, %v280_v11 }
  0xb4   : > { %v1203_v15 = vsel %vm268_vm2, %v1188_v10, %v285_v13  ;;  %v1216_v19 = vsel %vm271_vm3, %v1194_v12, %v295_v18  ;;  %v903_v27 = vpop.permute.xlu1 %902  ;;  %v403_v48 = vrot.slane %v1194_v12, 4 }
  0xb5   : > { %v911_v16 = vpack.i.bf16 %v1194_v12, %v1203_v15  ;;  %v906_v17 = vpack.i.bf16 %v1203_v15, %v1194_v12  ;;  %v905_v32 = vunpack.i.h.bf16 %v903_v27  ;;  %v904_v33 = vunpack.i.l.bf16 %v903_v27 }
  0xb6   : > { %v898_v28 = vpop.permute.xlu0 %897  ;;  %v402_v45 = vrot.slane %v1203_v15, 4  ;;  %v419_v15 = vrot.slane %v1188_v10, 4 }
  0xb7   : > { %912 = vrot.lane.b32.xlu1 %v911_v16, %s1038_s15  ;;  %907 = vrot.lane.b32.xlu0 %v906_v17, %s1039_s16  ;;  %v900_v34 = vunpack.i.h.bf16 %v898_v28  ;;  %v899_v35 = vunpack.i.l.bf16 %v898_v28  ;;  %v369_v39 = vsel %vm324_vm6, %v904_v33, %v905_v32  ;;  %v373_v40 = vsel %vm324_vm6, %v905_v32, %v904_v33 }
  0xb8   : > { %v420_v16 = vrot.slane %v1216_v19, 4 }
  0xb9   : > { %v361_v41 = vsel %vm315_vm7, %v900_v34, %v899_v35  ;;  %v364_v42 = vsel %vm315_vm7, %v899_v35, %v900_v34 }
  0xba   : > { %v375_v43 = vsel %vm340_vm9, %v373_v40, %v361_v41  ;;  %v374_v44 = vsel %vm339_vm8, %v369_v39, %v364_v42  ;;  %v376_v53 = vsel %vm352_vm10, %v364_v42, %v369_v39  ;;  %v377_v54 = vsel %vm353_vm11, %v361_v41, %v373_v40 }
  0xbb   : > { %391 = vrot.lane.b32.xlu1 %v1216_v19, %s1038_s15  ;;  %379 = vrot.lane.b32.xlu0 %v1216_v19, %s1039_s16  ;;  %v409_v55 = vrot.slane %v375_v43, 4  ;;  %v408_v56 = vrot.slane %v374_v44, 4  ;;  %v415_v11 = vrot.slane %v376_v53, 4  ;;  %v416_v12 = vrot.slane %v377_v54, 4 }
  0xbd   : > { %v429_v19 = vsel %vm423_vm12, %v1171_v2, %v416_v12  ;;  %v428_v26 = vsel %vm423_vm12, %v1165_v1, %v415_v11  ;;  %v432_v2 = vld [vmem:[%s1425_s2] sm:$0xff] }
  0xbf   : > { %389 = vrot.lane.b32.xlu0 %v1188_v10, %s1038_s15 }
  0xc3   : > { %436 = vperm.xlu0 %916, %v433_v21  }
 0x124   : > { %v384_v38 = vpop.permute.xlu1 %383 }
 0x129   : > { %v913_v46 = vpop.permute.xlu1 %912  ;;  %v908_v47 = vpop.permute.xlu0 %907 }
 0x12a   : > { %v915_v49 = vunpack.i.h.bf16 %v913_v46  ;;  %v914_v50 = vunpack.i.l.bf16 %v913_v46  ;;  %v910_v51 = vunpack.i.h.bf16 %v908_v47  ;;  %v909_v52 = vunpack.i.l.bf16 %v908_v47 }
 0x12c   : > { %v325_v57 = vsel %vm324_vm6, %v914_v50, %v915_v49  ;;  %v319_v58 = vsel %vm315_vm7, %v909_v52, %v910_v51  ;;  %v316_v59 = vsel %vm315_vm7, %v910_v51, %v909_v52  ;;  %v329_v60 = vsel %vm324_vm6, %v915_v49, %v914_v50 }
 0x12d   : > { %v380_v61 = vpop.permute.xlu0 %379  ;;  %v342_v62 = vsel %vm340_vm9, %v329_v60, %v316_v59  ;;  %v355_v63 = vsel %vm353_vm11, %v316_v59, %v329_v60  ;;  %v341_v0 = vsel %vm339_vm8, %v325_v57, %v319_v58  ;;  %v354_v3 = vsel %vm352_vm10, %v319_v58, %v325_v57  ;;  %v392_v17 = vpop.permute.xlu1 %391  ;;  %v621_v57 = vld [vmem:[%s1428_s5] sm:$0xff] }
 0x12e   : > { %v425_v4 = vsel %vm423_vm12, %v342_v62, %v403_v48  ;;  %v427_v5 = vsel %vm423_vm12, %v355_v63, %v409_v55  ;;  %v424_v7 = vsel %vm423_vm12, %v341_v0, %v402_v45  ;;  %v426_v9 = vsel %vm423_vm12, %v354_v3, %v408_v56 }
 0x12f   : > { %v816_v6 = vpack.c.bf16 %v427_v5, %v425_v4  ;;  %v818_v13 = vpack.c.bf16 %v426_v9, %v424_v7  ;;  %v385_v20 = vsel %vm315_vm7, %v384_v38, %v380_v61  ;;  %v388_v21 = vsel %vm315_vm7, %v380_v61, %v384_v38 }
 0x131   : > { %v390_v18 = vpop.permute.xlu0 %389  ;;  %817 = vmatprep.subr.bf16.mxu0 %v816_v6 }
 0x132   : > { %v393_v22 = vsel %vm324_vm6, %v390_v18, %v392_v17  ;;  %v397_v23 = vsel %vm324_vm6, %v392_v17, %v390_v18  ;;  %819 = vmatpush1.bf16.msra.mxu0 %v818_v13 }
 0x133   : > { %v398_v24 = vsel %vm339_vm8, %v393_v22, %v388_v21  ;;  %v399_v10 = vsel %vm340_vm9, %v397_v23, %v385_v20  ;;  %v401_v32 = vsel %vm353_vm11, %v385_v20, %v397_v23  ;;  %v400_v33 = vsel %vm352_vm10, %v388_v21, %v393_v22 }
 0x134   : > { %v431_v25 = vsel %vm423_vm12, %v399_v10, %v420_v16  ;;  %v430_v27 = vsel %vm423_vm12, %v398_v24, %v419_v15 }
 0x135   : > { %v820_v28 = vpack.c.bf16 %v431_v25, %v429_v19  ;;  %v822_v29 = vpack.c.bf16 %v430_v27, %v428_v26 }
 0x137   : > { %821 = vmatprep.subr.bf16.mxu0 %v820_v28 }
 0x138   : > { %823 = vmatpush1.bf16.msra.mxu0 %v822_v29 }
 0x139   : > { %805 = vmatprep.subr.msk.mxu0 %vm423_vm12, %v401_v32 }
 0x13c   : > { %806 = vmatpush1.msk.msra.mxu0 %vm423_vm12, %v400_v33 }
 0x13d   : > { %807 = vmatmul.mubr.msk.f32.vlgmr.msra.gmra.mrb[0].mxu0 %vm439_vm13, %v432_v2 }
 0x142   : > { %v437_v1 = vpop.permute.xlu0 %436 }
 0x210   : > { %v515_v34 = vpop.f32.mrb[0].mxu0 }
 0x211   : > { %v516_v35 = vadd.f32 %v515_v34, %v437_v1  ;;  %v517_v38 = vpop.f32.mrb[1].mxu0 }
 0x212   : > { %v518_v39 = vadd.f32 %v517_v38, %v437_v1 }
 0x213   : > { %vm520_vm14 = vcmp.ge.f32.partialorder %v516_v35, 0.0  ;;  %v522_v40 = vmul.f32 0.01, %v516_v35 }
 0x214   : > { %v523_v42 = vmul.f32 0.01, %v518_v39  ;;  %vm521_vm15 = vcmp.ge.f32.partialorder %v518_v39, 0.0 }
 0x215   : > { %v1294_v41 = vsel %vm520_vm14, %v516_v35, %v522_v40 }
 0x216   : > { %537 = vrot.lane.b32.xlu0 %v1294_v41, %s1036_s9  ;;  %531 = vrot.lane.b32.xlu1 %v1294_v41, %s1037_s14  ;;  %v1300_v43 = vsel %vm521_vm15, %v518_v39, %v523_v42 }
 0x217   : > { %v932_v54 = vpack.i.bf16 %v1300_v43, %v1294_v41  ;;  %v922_v55 = vpack.i.bf16 %v1294_v41, %v1300_v43 }
 0x21a   : > { %527 = vrot.lane.b32.xlu1 %v1300_v43, %s1037_s14 }
 0x21e   : > { %539 = vrot.lane.b32.xlu1 %v1300_v43, %s1036_s9  ;;  %s257_s9 = scalar_lea.vmem [#allocation5], %s802_s13 }
 0x21f   : > { %s725_s14 = sshll.u32 %s257_s9, 4  ;;  %s1383_s14 = int_to_ptr.vmem [resolvable:$true] %s725_s14 }
 0x220   : > { %s966_s18 = scalar_lea.vmem %s1383_s14, 256  ;;  %p973_p2 = scmp.lt.s32.totalorder %s1383_s14, %s971_s20 }
 0x221   : > { %p967_p5 = scmp.ne.s32.totalorder %s1383_s14, %s966_s18  ;;  %p974_p3 = scmp.lt.s32.totalorder %s972_s26, %s966_s18 }
 0x223   : > { %p968_p10 = pnand %p967_p5, %p1440_p9  ;;  %p975_p4 = por %p974_p3, %p973_p2 }
 0x225   : > { %p969_p12 = pneg %p968_p10 }
 0x227   : > { %p976_p7 = pnand %p975_p4, %p969_p12 }
 0x288   : > { %v532_v44 = vpop.permute.xlu1 %531  ;;  %v538_v46 = vpop.permute.xlu0 %537 }
 0x28c   : > { %v528_v45 = vpop.permute.xlu1 %527 }
 0x28d   : > { %v536_v48 = vsel %vm281_vm1, %v528_v45, %v532_v44  ;;  %v533_v50 = vsel %vm281_vm1, %v532_v44, %v528_v45 }
 0x290   : > { %v540_v47 = vpop.permute.xlu1 %539 }
 0x291   : > { %v1308_v49 = vsel %vm290_vm0, %v538_v46, %v540_v47  ;;  %v545_v56 = vsel %vm290_vm0, %v540_v47, %v538_v46  ;;  %v620_v46 = vld [vmem:[%s1427_s4] sm:$0xff]  ;;  %vm627_vm0 = vcmask 588800  }
 0x292   : > { %v546_v51 = vsel %vm268_vm2, %v1308_v49, %v536_v48  ;;  %v549_v8 = vsel %vm271_vm3, %v533_v50, %v545_v56 }
 0x293   : > { %v927_v52 = vpack.i.bf16 %v533_v50, %v546_v51  ;;  %v917_v53 = vpack.i.bf16 %v546_v51, %v533_v50 }
 0x295   : > { %928 = vrot.lane.b32.xlu1 %v927_v52, %s1038_s15  ;;  %918 = vrot.lane.b32.xlu0 %v917_v53, %s1039_s16 }
 0x299   : > { %933 = vrot.lane.b32.xlu1 %v932_v54, %s1038_s15  ;;  %923 = vrot.lane.b32.xlu0 %v922_v55, %s1039_s16 }
 0x29d   : > { %601 = vrot.lane.b32.xlu1 %v1308_v49, %s1039_s16  ;;  %597 = vrot.lane.b32.xlu0 %v549_v8, %s1039_s16 }
 0x2a1   : > { %609 = vrot.lane.b32.xlu1 %v549_v8, %s1038_s15  ;;  %607 = vrot.lane.b32.xlu0 %v1308_v49, %s1038_s15 }
 0x2a5   : > { %624 = vperm.xlu0 %916, %v621_v57  }
 0x307   : > { %v929_v58 = vpop.permute.xlu1 %928  ;;  %v919_v59 = vpop.permute.xlu0 %918 }
 0x308   : > { %v931_v60 = vunpack.i.h.bf16 %v929_v58  ;;  %v930_v14 = vunpack.i.l.bf16 %v929_v58  ;;  %v921_v61 = vunpack.i.h.bf16 %v919_v59  ;;  %v920_v62 = vunpack.i.l.bf16 %v919_v59 }
 0x30a   : > { %v557_v63 = vsel %vm315_vm7, %v921_v61, %v920_v62  ;;  %v569_v0 = vsel %vm324_vm6, %v931_v60, %v930_v14  ;;  %v560_v3 = vsel %vm315_vm7, %v920_v62, %v921_v61  ;;  %v565_v4 = vsel %vm324_vm6, %v930_v14, %v931_v60 }
 0x30b   : > { %v934_v5 = vpop.permute.xlu1 %933  ;;  %v924_v6 = vpop.permute.xlu0 %923  ;;  %v571_v7 = vsel %vm340_vm9, %v569_v0, %v557_v63  ;;  %v570_v9 = vsel %vm339_vm8, %v565_v4, %v560_v3  ;;  %v573_v10 = vsel %vm353_vm11, %v557_v63, %v569_v0  ;;  %v572_v25 = vsel %vm352_vm10, %v560_v3, %v565_v4 }
 0x30c   : > { %v936_v11 = vunpack.i.h.bf16 %v934_v5  ;;  %v935_v12 = vunpack.i.l.bf16 %v934_v5  ;;  %v926_v13 = vunpack.i.h.bf16 %v924_v6  ;;  %v925_v15 = vunpack.i.l.bf16 %v924_v6 }
 0x30d   : > { %v824_v16 = vpack.c.bf16 %v533_v50, %v571_v7  ;;  %v826_v17 = vpack.c.bf16 %v546_v51, %v570_v9 }
 0x30e   : > { %v587_v18 = vsel %vm324_vm6, %v935_v12, %v936_v11  ;;  %v591_v20 = vsel %vm324_vm6, %v936_v11, %v935_v12  ;;  %v579_v21 = vsel %vm315_vm7, %v926_v13, %v925_v15  ;;  %v582_v22 = vsel %vm315_vm7, %v925_v15, %v926_v13 }
 0x30f   : > { %825 = vmatprep.subr.bf16.mxu1 %v824_v16  ;;  %v602_v23 = vpop.permute.xlu1 %601  ;;  %v598_v24 = vpop.permute.xlu0 %597  ;;  %v593_v19 = vsel %vm340_vm9, %v591_v20, %v579_v21  ;;  %v592_v26 = vsel %vm339_vm8, %v587_v18, %v582_v22  ;;  %v595_v29 = vsel %vm353_vm11, %v579_v21, %v591_v20  ;;  %v594_v1 = vsel %vm352_vm10, %v582_v22, %v587_v18 }
 0x310   : > { %827 = vmatpush1.bf16.msra.mxu1 %v826_v17  ;;  %v828_v27 = vpack.c.bf16 %v593_v19, %v573_v10  ;;  %v830_v28 = vpack.c.bf16 %v592_v26, %v572_v25  ;;  %v832_v33 = vpack.c.bf16 %v595_v29, %v1300_v43  ;;  %v603_v34 = vsel %vm315_vm7, %v602_v23, %v598_v24 }
 0x311   : > { %v606_v40 = vsel %vm315_vm7, %v598_v24, %v602_v23  ;;  %v834_v42 = vpack.c.bf16 %v594_v1, %v1294_v41 }
 0x312   : > { %829 = vmatprep.subr.bf16.mxu1 %v828_v27 }
 0x313   : > { %v610_v32 = vpop.permute.xlu1 %609  ;;  %v608_v2 = vpop.permute.xlu0 %607 }
 0x314   : > { %v611_v35 = vsel %vm324_vm6, %v608_v2, %v610_v32  ;;  %v615_v38 = vsel %vm324_vm6, %v610_v32, %v608_v2  ;;  %831 = vmatpush1.bf16.msra.mxu1 %v830_v28 }
 0x315   : > { %v617_v39 = vsel %vm340_vm9, %v615_v38, %v603_v34  ;;  %833 = vmatprep.subr.bf16.mxu1 %v832_v33  ;;  %v616_v44 = vsel %vm339_vm8, %v611_v35, %v606_v40  ;;  %v619_v31 = vsel %vm353_vm11, %v603_v34, %v615_v38  ;;  %v618_v41 = vsel %vm352_vm10, %v606_v40, %v611_v35 }
 0x316   : > { %v836_v43 = vpack.c.bf16 %v549_v8, %v617_v39  ;;  %v838_v45 = vpack.c.bf16 %v1308_v49, %v616_v44 }
 0x318   : > { %835 = vmatpush1.bf16.msra.mxu1 %v834_v42 }
 0x319   : > { %837 = vmatprep.subr.bf16.mxu1 %v836_v43 }
 0x31c   : > { %839 = vmatpush1.bf16.msra.mxu1 %v838_v45 }
 0x31d   : > { %647 = vmatprep.subr.mxu1 %v619_v31 }
 0x320   : > { %648 = vmatpush1.msra.mxu1 %v618_v41 }
 0x321   : > { %808 = vmatmul.mubr.msk.f32.vlgmr.msra.gmra.mrb[0].mxu1 %vm627_vm0, %v620_v46 }
 0x324   : > { %v625_v30 = vpop.permute.xlu0 %624 }
 0x3f4   : > { %v697_v47 = vpop.f32.mrb[0].mxu1 }
 0x3f5   : > { %v698_v48 = vadd.f32 %v697_v47, %v625_v30  ;;  %v699_v49 = vpop.f32.mrb[1].mxu1 }
 0x3f6   : > { %v700_v50 = vadd.f32 %v699_v49, %v625_v30 }
 0x3f7   : > { %vm702_vm1 = vcmp.ge.f32.partialorder %v698_v48, 0.0  ;;  %v704_v37 = vmul.f32 0.01, %v698_v48 }
 0x3f8   : > { %vm703_vm2 = vcmp.ge.f32.partialorder %v700_v50, 0.0  ;;  %v705_v51 = vmul.f32 0.01, %v700_v50 }
 0x3f9   : > { %v706_v52 = vsel %vm702_vm1, %v698_v48, %v704_v37 }
 0x3fa   : > { %708 = vst [vmem:[%s257_s9] sm:$0xff] %v706_v52  ;;  %v707_v36 = vsel %vm703_vm2, %v700_v50, %v705_v51 }
 0x3fb   : > { %709 = vst [vmem:[%s257_s9 + $0x8] sm:$0xff] %v707_v36 }
 0x3fc   : > { %979 = shalt.err (!%p976_p7)
}
 0x3fd   : > { %s980_s28 = scalar_lea.hbm %s1381_s17, 256  ;;  %s984_s12 = scalar_lea.hbm %s1429_s6, 512 }
 0x3fe   : > { %p981_p8 = scmp.ne.s32.totalorder %s1381_s17, %s980_s28  ;;  %p985_p1 = scmp.lt.u32.totalorder %s1381_s17, %s1429_s6 }
 0x3ff   : > { %p986_p0 = scmp.lt.u32.totalorder %s984_s12, %s980_s28  ;;  %p988_p5 = scmp.lt.u32.totalorder %s980_s28, %s1381_s17 }
 0x400   : > { %p982_p11 = pnand %p981_p8, %p1440_p9 }
 0x401   : > { %p987_p6 = por %p986_p0, %p985_p1 }
 0x402   : > { %p983_p13 = pneg %p982_p11 }
 0x403   : > { %p989_p10 = por %p988_p5, %p987_p6 }
 0x405   : > { %p990_p12 = pnand %p989_p10, %p983_p13 }
 0x407   : > { %993 = shalt.err (!%p990_p12)
}
 0x408   : > { %844 = dma.vmem_to_hbm [thread:$0]  (%p1440_p9), %s1383_s14, 256, %s1381_s17, %s711_s25  }
 0x409 PF: > { %p856_p2 = scmp.ge.s32.totalorder %s1032_s24, 2  ;;  %s737_s9 = sand.u32 1, %s1020_s21  }
 0x40a   : > { %p1441_p3 = scmp.ne.s32.totalorder %s1434_s8, 0  ;;  %s738_s15 = scalar_lea.sflag [#allocation4], %s737_s9 }
 0x40c   : > { %p851_p4 = pnand %p856_p2, %p1441_p3 }
 0x40e   : > { %1015 = dma.done.wait (!%p851_p4), %s738_s15, 256  }
 0x40f   : > { %1017 = vsyncadd (!%p851_p4), %s738_s15, 4294967040  ;;  %p17_p7 = scmp.ge.s32.totalorder %s1102_s27, 4   ;;  %s1442_s21 = smov %s1024_s22 }
 0x410   : > { %s1443_s22 = smov %s1028_s23  ;;  %s1444_s23 = smov %s1113_s30 }
 0x411   : > { %s1445_s24 = smov %s1102_s27  ;;  %19 = sbr.rel (!%p17_p7) target bundleno = 4 (0x4), region = 84 }
 0x418   :  { %743 = vsyncpa [#allocation3], 1 }
 0x419   :  { %745 = vsyncpa [#allocation3 + $0x1], 1 }
 0x41a   :  { %746 = vsyncpa [#allocation4], 1 }
 0x41b   :  { %748 = vsyncpa [#allocation4 + $0x1], 1 }

</bundles_post_ra>
